<compile_context>
chip_gen: v7x
topology: tpu7x:2x2x1
jax: 0.10.0
libtpu: 0.0.40
codegen_flags: <defaults>
</compile_context>

<pallas_src>
import jax
import jax.numpy as jnp
from jax.experimental import pallas as pl
from jax.experimental.pallas import tpu as pltpu

# ---------------- model hyper-parameters (small, deterministic) ----------------
EMBED = 32      # embedding_size
NUM_HEADS = 4   # num_heads
MAX_LEN = 8     # max_len / sequence length
HIDDEN = 64     # hidden
BATCH = 2
LN_EPS = 1e-5


# ------------------------------- Pallas kernel ----------------------------------
def _layernorm(x, g, b):
    mean = jnp.mean(x, axis=-1, keepdims=True)
    var = jnp.mean((x - mean) ** 2, axis=-1, keepdims=True)
    return (x - mean) * jax.lax.rsqrt(var + LN_EPS) * g + b


def encoder_layer_kernel(h_ref, mask_ref, wqkv_ref, wo_ref, w1_ref, w2_ref,
                         vec_ref, o_ref):
    """Fused MHSA + LN1 + FFN + LN2 over the whole (flattened) batch."""
    B, S, E = h_ref.shape          # (B, S, E)
    HID = w1_ref.shape[1]
    H = NUM_HEADS
    dh = E // H
    N = B * S
    G = H * B                      # attention groups: g = head * B + b

    # ---- packed bias / LayerNorm vectors (single slab, static slices) ----
    bqkv = vec_ref[0:1, 0:3 * E]   # (1, 3E)  = [bq | bk | bv]
    b1   = vec_ref[1:2, 0:HID]     # (1, HID)
    bo   = vec_ref[2:3, 0:E]
    g1   = vec_ref[3:4, 0:E]
    be1  = vec_ref[4:5, 0:E]
    b2   = vec_ref[5:6, 0:E]
    g2   = vec_ref[6:7, 0:E]
    be2  = vec_ref[7:8, 0:E]

    h = h_ref[...].reshape(N, E)                       # (N, E) f32
    hb = h.astype(jnp.bfloat16)                        # MXU operand

    # ---- fused QKV projection: ONE MXU dot with a 96-lane output ----
    qkv = jnp.dot(hb, wqkv_ref[...],
                  preferred_element_type=jnp.float32) + bqkv   # (N, 3E) f32

    # regroup per head: (N, 3E) -> (G, S, dh), group g = head*B + b
    def heads(col0):
        parts = [qkv[:, col0 + hd * dh: col0 + (hd + 1) * dh] for hd in range(H)]
        stacked = jnp.concatenate(parts, axis=0)       # (H*N, dh), sublane-aligned
        return stacked.reshape(G, S, dh).astype(jnp.bfloat16)

    q_g = heads(0)
    k_g = heads(E)
    v_g = heads(2 * E)

    # additive key-padding mask (0 keep / -1e9 drop), broadcast over heads
    madd = (mask_ref[...] - 1.0) * 1e9                 # (B, S) f32
    madd = jnp.broadcast_to(madd.reshape(1, B, 1, S),
                            (H, B, 1, S)).reshape(G, 1, S)

    # ---- batched scaled dot-product attention over all B*H groups at once ----
    scale = 1.0 / float(dh) ** 0.5
    s = jnp.einsum('gqd,gkd->gqk', q_g, k_g,
                   preferred_element_type=jnp.float32)  # (G, S, S)
    s = s * scale + madd
    s = s - jnp.max(s, axis=-1, keepdims=True)
    p = jnp.exp(s)
    p = p * pl.reciprocal(jnp.sum(p, axis=-1, keepdims=True), approx=True)

    ho = jnp.einsum('gqk,gkd->gqd', p.astype(jnp.bfloat16), v_g,
                    preferred_element_type=jnp.float32)  # (G, S, dh)

    # ---- output projection: batched per-head einsum, then sum over heads ----
    ho_h = ho.reshape(H, N, dh).astype(jnp.bfloat16)     # leading-dim regroup
    proj = jnp.einsum('hnd,hde->hne', ho_h, wo_ref[...],
                      preferred_element_type=jnp.float32)  # (H, N, E)
    attn = jnp.sum(proj, axis=0)                         # (N, E)

    x = h + attn + bo                                    # residual + proj bias
    x = _layernorm(x, g1, be1)

    # ---- position-wise feed-forward ----
    y = jnp.dot(x.astype(jnp.bfloat16), w1_ref[...],
                preferred_element_type=jnp.float32) + b1
    y = jnp.maximum(y, 0.0)                              # ReLU (f32)
    y = jnp.dot(y.astype(jnp.bfloat16), w2_ref[...],
                preferred_element_type=jnp.float32) + b2
    z = _layernorm(x + y, g2, be2)

    o_ref[...] = z.reshape(B, S, E).astype(o_ref.dtype)


# ------------------------------- pallas_call glue --------------------------------
@jax.jit
def encoder_layer(h, h_mask, packed):
    """Wrapper is just the pallas_call: all repacking happens once in pack_params."""
    B, S, E = h.shape
    vmem = pl.BlockSpec(memory_space=pltpu.MemorySpace.VMEM)
    return pl.pallas_call(
        encoder_layer_kernel,
        out_shape=jax.ShapeDtypeStruct((B, S, E), h.dtype),
        in_specs=[vmem] * 7,
        out_specs=vmem,
    )(h, h_mask, packed["wqkv"], packed["wo"], packed["w1"], packed["w2"],
      packed["vec"])


# ----------------------------- deterministic params ------------------------------
def init_params(key, embed, hidden):
    keys = jax.random.split(key, 10)
    s = 0.02
    return {
        "wq": s * jax.random.normal(keys[0], (embed, embed), jnp.float32),
        "bq": jnp.zeros((1, embed), jnp.float32),
        "wk": s * jax.random.normal(keys[1], (embed, embed), jnp.float32),
        "bk": jnp.zeros((1, embed), jnp.float32),
        "wv": s * jax.random.normal(keys[2], (embed, embed), jnp.float32),
        "bv": jnp.zeros((1, embed), jnp.float32),
        "wo": s * jax.random.normal(keys[3], (embed, embed), jnp.float32),
        "bo": jnp.zeros((1, embed), jnp.float32),
        "ln1_g": jnp.ones((1, embed), jnp.float32),
        "ln1_b": jnp.zeros((1, embed), jnp.float32),
        "w1": s * jax.random.normal(keys[4], (embed, hidden), jnp.float32),
        "b1": jnp.zeros((1, hidden), jnp.float32),
        "w2": s * jax.random.normal(keys[5], (hidden, embed), jnp.float32),
        "b2": jnp.zeros((1, embed), jnp.float32),
        "ln2_g": jnp.ones((1, embed), jnp.float32),
        "ln2_b": jnp.zeros((1, embed), jnp.float32),
    }


def pack_params(p):
    """ONE-TIME packing of raw params into kernel-friendly operands."""
    E = p["wq"].shape[0]
    HID = p["w1"].shape[1]
    H = NUM_HEADS
    dh = E // H
    assert 3 * E <= 128 and HID <= 128, "vector slab layout assumes small widths"
    bf16 = jnp.bfloat16

    # fused [Wq | Wk | Wv] (E, 3E) bf16; heads live in 8-lane column groups
    wqkv = jnp.concatenate([p["wq"], p["wk"], p["wv"]], axis=1).astype(bf16)
    # output projection pre-split per head (row-major head blocks of Wo)
    wo_h = p["wo"].reshape(H, dh, E).astype(bf16)

    # single (8, 128) f32 slab holding all bias / LayerNorm vectors
    vec = jnp.zeros((8, 128), jnp.float32)
    vec = vec.at[0, 0:3 * E].set(jnp.concatenate(
        [p["bq"].reshape(-1), p["bk"].reshape(-1), p["bv"].reshape(-1)]))
    vec = vec.at[1, 0:HID].set(p["b1"].reshape(-1))
    vec = vec.at[2, 0:E].set(p["bo"].reshape(-1))
    vec = vec.at[3, 0:E].set(p["ln1_g"].reshape(-1))
    vec = vec.at[4, 0:E].set(p["ln1_b"].reshape(-1))
    vec = vec.at[5, 0:E].set(p["b2"].reshape(-1))
    vec = vec.at[6, 0:E].set(p["ln2_g"].reshape(-1))
    vec = vec.at[7, 0:E].set(p["ln2_b"].reshape(-1))

    return {"wqkv": wqkv, "wo": wo_h,
            "w1": p["w1"].astype(bf16), "w2": p["w2"].astype(bf16),
            "vec": vec}


if __name__ == "__main__":
    key = jax.random.PRNGKey(0)
    k_h, k_p = jax.random.split(key)

    h = jax.random.normal(k_h, (BATCH, MAX_LEN, EMBED), jnp.float32)
    # key-padding mask: 1 = valid, 0 = pad (second batch has last 3 positions padded)
    h_mask = jnp.ones((BATCH, MAX_LEN), jnp.float32)
    h_mask = h_mask.at[1, MAX_LEN - 3:].set(0.0)

    params = init_params(k_p, EMBED, HIDDEN)
    packed = pack_params(params)          # one-time, outside the per-call path

    out = encoder_layer(h, h_mask, packed)
    jax.block_until_ready(out)
    assert out.shape == (BATCH, MAX_LEN, EMBED)
    assert bool(jnp.all(jnp.isfinite(out)))
    print("KERNEL_OK")
</pallas_src>

<mosaic_0001>
module attributes {stable_mosaic.version = 11 : i64} {
  func.func @encoder_layer_kernel(%arg0: memref<2x8x32xf32, #tpu.memory_space<vmem>>, %arg1: memref<2x8xf32, #tpu.memory_space<vmem>>, %arg2: memref<32x96xbf16, #tpu.memory_space<vmem>>, %arg3: memref<4x8x32xbf16, #tpu.memory_space<vmem>>, %arg4: memref<32x64xbf16, #tpu.memory_space<vmem>>, %arg5: memref<64x32xbf16, #tpu.memory_space<vmem>>, %arg6: memref<8x128xf32, #tpu.memory_space<vmem>>, %arg7: memref<2x8x32xf32, #tpu.memory_space<vmem>>) attributes {dimension_semantics = [], scalar_prefetch = 0 : i64, scratch_operands = 0 : i64, tpu.core_type = #tpu.core_type<tc>} {
    %c0 = arith.constant 0 : index
    %c0_0 = arith.constant 0 : index
    %0 = vector.load %arg6[%c0, %c0_0] : memref<8x128xf32, #tpu.memory_space<vmem>>, vector<1x96xf32>
    %c1 = arith.constant 1 : index
    %c0_1 = arith.constant 0 : index
    %1 = vector.load %arg6[%c1, %c0_1] : memref<8x128xf32, #tpu.memory_space<vmem>>, vector<1x64xf32>
    %c2 = arith.constant 2 : index
    %c0_2 = arith.constant 0 : index
    %2 = vector.load %arg6[%c2, %c0_2] : memref<8x128xf32, #tpu.memory_space<vmem>>, vector<1x32xf32>
    %c3 = arith.constant 3 : index
    %c0_3 = arith.constant 0 : index
    %3 = vector.load %arg6[%c3, %c0_3] : memref<8x128xf32, #tpu.memory_space<vmem>>, vector<1x32xf32>
    %c4 = arith.constant 4 : index
    %c0_4 = arith.constant 0 : index
    %4 = vector.load %arg6[%c4, %c0_4] : memref<8x128xf32, #tpu.memory_space<vmem>>, vector<1x32xf32>
    %c5 = arith.constant 5 : index
    %c0_5 = arith.constant 0 : index
    %5 = vector.load %arg6[%c5, %c0_5] : memref<8x128xf32, #tpu.memory_space<vmem>>, vector<1x32xf32>
    %c6 = arith.constant 6 : index
    %c0_6 = arith.constant 0 : index
    %6 = vector.load %arg6[%c6, %c0_6] : memref<8x128xf32, #tpu.memory_space<vmem>>, vector<1x32xf32>
    %c7 = arith.constant 7 : index
    %c0_7 = arith.constant 0 : index
    %7 = vector.load %arg6[%c7, %c0_7] : memref<8x128xf32, #tpu.memory_space<vmem>>, vector<1x32xf32>
    %c0_8 = arith.constant 0 : index
    %c0_9 = arith.constant 0 : index
    %c0_10 = arith.constant 0 : index
    %8 = vector.load %arg0[%c0_8, %c0_9, %c0_10] : memref<2x8x32xf32, #tpu.memory_space<vmem>>, vector<2x8x32xf32>
    %9 = vector.shape_cast %8 : vector<2x8x32xf32> to vector<16x32xf32>
    %10 = arith.truncf %9 : vector<16x32xf32> to vector<16x32xbf16>
    %c0_11 = arith.constant 0 : index
    %c0_12 = arith.constant 0 : index
    %11 = vector.load %arg2[%c0_11, %c0_12] : memref<32x96xbf16, #tpu.memory_space<vmem>>, vector<32x96xbf16>
    %cst = arith.constant dense<0.000000e+00> : vector<16x96xf32>
    %12 = tpu.matmul %10, %11, %cst {dimension_numbers = #tpu.dot_dimension_numbers<[1], [0], [0], [1], [0, 0, 1, 1], [], []>} : vector<16x32xbf16>, vector<32x96xbf16>, vector<16x96xf32> -> vector<16x96xf32>
    %13 = vector.broadcast %0 : vector<1x96xf32> to vector<16x96xf32>
    %14 = arith.addf %12, %13 : vector<16x96xf32>
    %15 = vector.extract_strided_slice %14 {offsets = [0, 0], sizes = [16, 8], strides = [1, 1]} : vector<16x96xf32> to vector<16x8xf32>
    %16 = vector.extract_strided_slice %14 {offsets = [0, 8], sizes = [16, 8], strides = [1, 1]} : vector<16x96xf32> to vector<16x8xf32>
    %17 = vector.extract_strided_slice %14 {offsets = [0, 16], sizes = [16, 8], strides = [1, 1]} : vector<16x96xf32> to vector<16x8xf32>
    %18 = vector.extract_strided_slice %14 {offsets = [0, 24], sizes = [16, 8], strides = [1, 1]} : vector<16x96xf32> to vector<16x8xf32>
    %19 = tpu.concatenate %15, %16, %17, %18 in 0 : vector<16x8xf32>, vector<16x8xf32>, vector<16x8xf32>, vector<16x8xf32> -> vector<64x8xf32>
    %20 = vector.shape_cast %19 : vector<64x8xf32> to vector<8x8x8xf32>
    %21 = arith.truncf %20 : vector<8x8x8xf32> to vector<8x8x8xbf16>
    %22 = vector.extract_strided_slice %14 {offsets = [0, 32], sizes = [16, 8], strides = [1, 1]} : vector<16x96xf32> to vector<16x8xf32>
    %23 = vector.extract_strided_slice %14 {offsets = [0, 40], sizes = [16, 8], strides = [1, 1]} : vector<16x96xf32> to vector<16x8xf32>
    %24 = vector.extract_strided_slice %14 {offsets = [0, 48], sizes = [16, 8], strides = [1, 1]} : vector<16x96xf32> to vector<16x8xf32>
    %25 = vector.extract_strided_slice %14 {offsets = [0, 56], sizes = [16, 8], strides = [1, 1]} : vector<16x96xf32> to vector<16x8xf32>
    %26 = tpu.concatenate %22, %23, %24, %25 in 0 : vector<16x8xf32>, vector<16x8xf32>, vector<16x8xf32>, vector<16x8xf32> -> vector<64x8xf32>
    %27 = vector.shape_cast %26 : vector<64x8xf32> to vector<8x8x8xf32>
    %28 = arith.truncf %27 : vector<8x8x8xf32> to vector<8x8x8xbf16>
    %29 = vector.extract_strided_slice %14 {offsets = [0, 64], sizes = [16, 8], strides = [1, 1]} : vector<16x96xf32> to vector<16x8xf32>
    %30 = vector.extract_strided_slice %14 {offsets = [0, 72], sizes = [16, 8], strides = [1, 1]} : vector<16x96xf32> to vector<16x8xf32>
    %31 = vector.extract_strided_slice %14 {offsets = [0, 80], sizes = [16, 8], strides = [1, 1]} : vector<16x96xf32> to vector<16x8xf32>
    %32 = vector.extract_strided_slice %14 {offsets = [0, 88], sizes = [16, 8], strides = [1, 1]} : vector<16x96xf32> to vector<16x8xf32>
    %33 = tpu.concatenate %29, %30, %31, %32 in 0 : vector<16x8xf32>, vector<16x8xf32>, vector<16x8xf32>, vector<16x8xf32> -> vector<64x8xf32>
    %34 = vector.shape_cast %33 : vector<64x8xf32> to vector<8x8x8xf32>
    %35 = arith.truncf %34 : vector<8x8x8xf32> to vector<8x8x8xbf16>
    %c0_13 = arith.constant 0 : index
    %c0_14 = arith.constant 0 : index
    %36 = vector.load %arg1[%c0_13, %c0_14] : memref<2x8xf32, #tpu.memory_space<vmem>>, vector<2x8xf32>
    %cst_15 = arith.constant 1.000000e+00 : f32
    %37 = vector.broadcast %cst_15 : f32 to vector<2x8xf32>
    %38 = arith.subf %36, %37 : vector<2x8xf32>
    %cst_16 = arith.constant 1.000000e+09 : f32
    %39 = vector.broadcast %cst_16 : f32 to vector<2x8xf32>
    %40 = arith.mulf %38, %39 : vector<2x8xf32>
    %41 = vector.shape_cast %40 : vector<2x8xf32> to vector<1x2x1x8xf32>
    %42 = vector.shape_cast %41 : vector<1x2x1x8xf32> to vector<1x2x1x8xf32>
    %43 = vector.broadcast %42 : vector<1x2x1x8xf32> to vector<4x2x1x8xf32>
    %44 = vector.shape_cast %43 : vector<4x2x1x8xf32> to vector<8x1x8xf32>
    "tpu.trace_start"() <{level = 10 : i32, message = "gqd,gkd->gqk"}> : () -> ()
    %cst_17 = arith.constant dense<0.000000e+00> : vector<8x8x8xf32>
    %45 = tpu.matmul %21, %28, %cst_17 {dimension_numbers = #tpu.dot_dimension_numbers<[2], [2], [1], [1], [0, 0, 0, 1, 1, 1], [0], [0]>} : vector<8x8x8xbf16>, vector<8x8x8xbf16>, vector<8x8x8xf32> -> vector<8x8x8xf32>
    "tpu.trace_stop"() : () -> ()
    %cst_18 = arith.constant 0.353553385 : f32
    %46 = vector.broadcast %cst_18 : f32 to vector<8x8x8xf32>
    %47 = arith.mulf %45, %46 : vector<8x8x8xf32>
    %48 = vector.broadcast %44 : vector<8x1x8xf32> to vector<8x8x8xf32>
    %49 = arith.addf %47, %48 : vector<8x8x8xf32>
    %cst_19 = arith.constant dense<0xFF800000> : vector<8x8xf32>
    %50 = vector.multi_reduction <maximumf>, %49, %cst_19 [2] : vector<8x8x8xf32> to vector<8x8xf32>
    %51 = vector.shape_cast %50 : vector<8x8xf32> to vector<8x8x1xf32>
    %52 = vector.broadcast %51 : vector<8x8x1xf32> to vector<8x8x8xf32>
    %53 = arith.subf %49, %52 : vector<8x8x8xf32>
    %54 = math.exp %53 : vector<8x8x8xf32>
    %cst_20 = arith.constant dense<0.000000e+00> : vector<8x8xf32>
    %55 = vector.multi_reduction <add>, %54, %cst_20 [2] : vector<8x8x8xf32> to vector<8x8xf32>
    %56 = vector.shape_cast %55 : vector<8x8xf32> to vector<8x8x1xf32>
    %57 = tpu.reciprocal %56 {approx = true} : vector<8x8x1xf32> -> vector<8x8x1xf32>
    %58 = vector.broadcast %57 : vector<8x8x1xf32> to vector<8x8x8xf32>
    %59 = arith.mulf %54, %58 : vector<8x8x8xf32>
    %60 = arith.truncf %59 : vector<8x8x8xf32> to vector<8x8x8xbf16>
    "tpu.trace_start"() <{level = 10 : i32, message = "gqk,gkd->gqd"}> : () -> ()
    %cst_21 = arith.constant dense<0.000000e+00> : vector<8x8x8xf32>
    %61 = tpu.matmul %60, %35, %cst_21 {dimension_numbers = #tpu.dot_dimension_numbers<[2], [1], [1], [2], [0, 0, 0, 1, 1, 2], [0], [0]>} : vector<8x8x8xbf16>, vector<8x8x8xbf16>, vector<8x8x8xf32> -> vector<8x8x8xf32>
    "tpu.trace_stop"() : () -> ()
    %62 = vector.shape_cast %61 : vector<8x8x8xf32> to vector<4x16x8xf32>
    %63 = arith.truncf %62 : vector<4x16x8xf32> to vector<4x16x8xbf16>
    %c0_22 = arith.constant 0 : index
    %c0_23 = arith.constant 0 : index
    %c0_24 = arith.constant 0 : index
    %64 = vector.load %arg3[%c0_22, %c0_23, %c0_24] : memref<4x8x32xbf16, #tpu.memory_space<vmem>>, vector<4x8x32xbf16>
    "tpu.trace_start"() <{level = 10 : i32, message = "hnd,hde->hne"}> : () -> ()
    %cst_25 = arith.constant dense<0.000000e+00> : vector<4x16x32xf32>
    %65 = tpu.matmul %63, %64, %cst_25 {dimension_numbers = #tpu.dot_dimension_numbers<[2], [1], [1], [2], [0, 0, 0, 1, 1, 2], [0], [0]>} : vector<4x16x8xbf16>, vector<4x8x32xbf16>, vector<4x16x32xf32> -> vector<4x16x32xf32>
    "tpu.trace_stop"() : () -> ()
    %cst_26 = arith.constant dense<0.000000e+00> : vector<16x32xf32>
    %66 = vector.multi_reduction <add>, %65, %cst_26 [0] : vector<4x16x32xf32> to vector<16x32xf32>
    %67 = arith.addf %9, %66 : vector<16x32xf32>
    %68 = vector.broadcast %2 : vector<1x32xf32> to vector<16x32xf32>
    %69 = arith.addf %67, %68 : vector<16x32xf32>
    %cst_27 = arith.constant dense<0.000000e+00> : vector<16xf32>
    %70 = vector.multi_reduction <add>, %69, %cst_27 [1] : vector<16x32xf32> to vector<16xf32>
    %71 = vector.shape_cast %70 : vector<16xf32> to vector<16x1xf32>
    %cst_28 = arith.constant 3.200000e+01 : f32
    %72 = vector.broadcast %cst_28 : f32 to vector<16x1xf32>
    %73 = arith.divf %71, %72 : vector<16x1xf32>
    %74 = vector.broadcast %73 : vector<16x1xf32> to vector<16x32xf32>
    %75 = arith.subf %69, %74 : vector<16x32xf32>
    %76 = arith.mulf %75, %75 : vector<16x32xf32>
    %cst_29 = arith.constant dense<0.000000e+00> : vector<16xf32>
    %77 = vector.multi_reduction <add>, %76, %cst_29 [1] : vector<16x32xf32> to vector<16xf32>
    %78 = vector.shape_cast %77 : vector<16xf32> to vector<16x1xf32>
    %cst_30 = arith.constant 3.200000e+01 : f32
    %79 = vector.broadcast %cst_30 : f32 to vector<16x1xf32>
    %80 = arith.divf %78, %79 : vector<16x1xf32>
    %81 = vector.broadcast %73 : vector<16x1xf32> to vector<16x32xf32>
    %82 = arith.subf %69, %81 : vector<16x32xf32>
    %cst_31 = arith.constant 9.99999974E-6 : f32
    %83 = vector.broadcast %cst_31 : f32 to vector<16x1xf32>
    %84 = arith.addf %80, %83 : vector<16x1xf32>
    %85 = math.rsqrt %84 : vector<16x1xf32>
    %86 = vector.broadcast %85 : vector<16x1xf32> to vector<16x32xf32>
    %87 = arith.mulf %82, %86 : vector<16x32xf32>
    %88 = vector.broadcast %3 : vector<1x32xf32> to vector<16x32xf32>
    %89 = arith.mulf %87, %88 : vector<16x32xf32>
    %90 = vector.broadcast %4 : vector<1x32xf32> to vector<16x32xf32>
    %91 = arith.addf %89, %90 : vector<16x32xf32>
    %92 = arith.truncf %91 : vector<16x32xf32> to vector<16x32xbf16>
    %c0_32 = arith.constant 0 : index
    %c0_33 = arith.constant 0 : index
    %93 = vector.load %arg4[%c0_32, %c0_33] : memref<32x64xbf16, #tpu.memory_space<vmem>>, vector<32x64xbf16>
    %cst_34 = arith.constant dense<0.000000e+00> : vector<16x64xf32>
    %94 = tpu.matmul %92, %93, %cst_34 {dimension_numbers = #tpu.dot_dimension_numbers<[1], [0], [0], [1], [0, 0, 1, 1], [], []>} : vector<16x32xbf16>, vector<32x64xbf16>, vector<16x64xf32> -> vector<16x64xf32>
    %95 = vector.broadcast %1 : vector<1x64xf32> to vector<16x64xf32>
    %96 = arith.addf %94, %95 : vector<16x64xf32>
    %cst_35 = arith.constant 0.000000e+00 : f32
    %97 = vector.broadcast %cst_35 : f32 to vector<16x64xf32>
    %98 = arith.maximumf %96, %97 : vector<16x64xf32>
    %99 = arith.truncf %98 : vector<16x64xf32> to vector<16x64xbf16>
    %c0_36 = arith.constant 0 : index
    %c0_37 = arith.constant 0 : index
    %100 = vector.load %arg5[%c0_36, %c0_37] : memref<64x32xbf16, #tpu.memory_space<vmem>>, vector<64x32xbf16>
    %cst_38 = arith.constant dense<0.000000e+00> : vector<16x32xf32>
    %101 = tpu.matmul %99, %100, %cst_38 {dimension_numbers = #tpu.dot_dimension_numbers<[1], [0], [0], [1], [0, 0, 1, 1], [], []>} : vector<16x64xbf16>, vector<64x32xbf16>, vector<16x32xf32> -> vector<16x32xf32>
    %102 = vector.broadcast %5 : vector<1x32xf32> to vector<16x32xf32>
    %103 = arith.addf %101, %102 : vector<16x32xf32>
    %104 = arith.addf %91, %103 : vector<16x32xf32>
    %cst_39 = arith.constant dense<0.000000e+00> : vector<16xf32>
    %105 = vector.multi_reduction <add>, %104, %cst_39 [1] : vector<16x32xf32> to vector<16xf32>
    %106 = vector.shape_cast %105 : vector<16xf32> to vector<16x1xf32>
    %cst_40 = arith.constant 3.200000e+01 : f32
    %107 = vector.broadcast %cst_40 : f32 to vector<16x1xf32>
    %108 = arith.divf %106, %107 : vector<16x1xf32>
    %109 = vector.broadcast %108 : vector<16x1xf32> to vector<16x32xf32>
    %110 = arith.subf %104, %109 : vector<16x32xf32>
    %111 = arith.mulf %110, %110 : vector<16x32xf32>
    %cst_41 = arith.constant dense<0.000000e+00> : vector<16xf32>
    %112 = vector.multi_reduction <add>, %111, %cst_41 [1] : vector<16x32xf32> to vector<16xf32>
    %113 = vector.shape_cast %112 : vector<16xf32> to vector<16x1xf32>
    %cst_42 = arith.constant 3.200000e+01 : f32
    %114 = vector.broadcast %cst_42 : f32 to vector<16x1xf32>
    %115 = arith.divf %113, %114 : vector<16x1xf32>
    %116 = vector.broadcast %108 : vector<16x1xf32> to vector<16x32xf32>
    %117 = arith.subf %104, %116 : vector<16x32xf32>
    %cst_43 = arith.constant 9.99999974E-6 : f32
    %118 = vector.broadcast %cst_43 : f32 to vector<16x1xf32>
    %119 = arith.addf %115, %118 : vector<16x1xf32>
    %120 = math.rsqrt %119 : vector<16x1xf32>
    %121 = vector.broadcast %120 : vector<16x1xf32> to vector<16x32xf32>
    %122 = arith.mulf %117, %121 : vector<16x32xf32>
    %123 = vector.broadcast %6 : vector<1x32xf32> to vector<16x32xf32>
    %124 = arith.mulf %122, %123 : vector<16x32xf32>
    %125 = vector.broadcast %7 : vector<1x32xf32> to vector<16x32xf32>
    %126 = arith.addf %124, %125 : vector<16x32xf32>
    %127 = vector.shape_cast %126 : vector<16x32xf32> to vector<2x8x32xf32>
    %c0_44 = arith.constant 0 : index
    %c0_45 = arith.constant 0 : index
    %c0_46 = arith.constant 0 : index
    %128 = vector.load %arg7[%c0_44, %c0_45, %c0_46] : memref<2x8x32xf32, #tpu.memory_space<vmem>>, vector<2x8x32xf32>
    tpu.vector_store %arg7[%c0_44, %c0_45, %c0_46], %127 {strides = array<i32>} : memref<2x8x32xf32, #tpu.memory_space<vmem>>, vector<2x8x32xf32>,
    return
  }
}

</mosaic_0001>

<bundles_post_ra>
// kernel: encoder_layer.1
= control target key start
LH: loop header
LB: loop body
LE: loop exit
PB: predicated region body
PF: predicated region fallthrough
CT: control target
= control target key end

     0   :  { %12 = vsyncpa [#allocation3], 0  ;;  %s2305_s0 = inlined_call_operand.vmem [shape: f32[2,8,32], index: 0, kind: input, shape index: {}]   ;;  %s2306_s1 = inlined_call_operand.vmem [shape: f32[2,8], index: 1, kind: input, shape index: {}]   ;;  %s2307_s2 = inlined_call_operand.vmem [shape: bf16[32,96], index: 2, kind: input, shape index: {}]   ;;  %s2308_s3 = inlined_call_operand.vmem [shape: bf16[4,8,32], index: 3, kind: input, shape index: {}]   ;;  %s2309_s4 = inlined_call_operand.hbm [shape: bf16[32,64], index: 4, kind: input, shape index: {}]   ;;  %s2310_s5 = inlined_call_operand.vmem [shape: bf16[64,32], index: 5, kind: input, shape index: {}]   ;;  %s2311_s6 = inlined_call_operand.hbm [shape: f32[8,128], index: 6, kind: input, shape index: {}]   ;;  %s2312_s7 = inlined_call_operand.hbm [shape: f32[2,8,32], index: 7, kind: output, shape index: {}]  }
   0x1   :  { %13 = vsyncpa [#allocation6], 0 }
   0x2   :  { %14 = vsyncpa [#allocation4], 0  ;;  %s1938_s24 = smov [#allocation2]   ;;  %s1866_s28 = scalar_lea.hbm %s2309_s4, 256 }
   0x3   :  { %s28_s25 = sshll.u32 %s1938_s24, 4  ;;  %p1867_p0 = scmp.ne.s32.totalorder %s2309_s4, %s1866_s28  ;;  %s29_s25 = int_to_ptr.vmem [resolvable:$true] %s28_s25 }
   0x4   :  { %p1870_p1 = scmp.lt.u32.totalorder %s1866_s28, %s2309_s4 }
   0x6   :  { %p1872_p2 = pnand %p1870_p1, %p1867_p0 }
   0x8   :  { %1875 = shalt.err (!%p1872_p2)
}
   0x9   :  { %s1876_s10 = scalar_lea.vmem %s29_s25, 256  ;;  %p1881_p4 = scmp.lt.s32.totalorder %s29_s25, %s29_s25 }
   0xa   :  { %p1877_p3 = scmp.ne.s32.totalorder %s29_s25, %s1876_s10  ;;  %p1882_p5 = scmp.lt.s32.totalorder %s1876_s10, %s1876_s10 }
   0xc   :  { %p1883_p6 = por %p1882_p5, %p1881_p4 }
   0xe   :  { %p1884_p7 = pnand %p1883_p6, %p1877_p3 }
  0x10   :  { %1887 = shalt.err (!%p1884_p7)
}
  0x11   :  { %s1939_s11 = smov 64   ;;  %s1940_s12 = smov 4  }
  0x12   :  { %34 = dma.hbm_to_vmem [thread:$0]  %s2309_s4, 256, %s29_s25, [#allocation3], %s1939_s11, %s1939_s11, %s1940_s12  }
  0x13   :  { %s1941_s15 = smov [#allocation5]   ;;  %s1888_s19 = scalar_lea.hbm %s2311_s6, 128 }
  0x14   :  { %s43_s16 = sshll.u32 %s1941_s15, 4  ;;  %p1889_p8 = scmp.ne.s32.totalorder %s2311_s6, %s1888_s19  ;;  %s44_s16 = int_to_ptr.vmem [resolvable:$true] %s43_s16 }
  0x15   :  { %p1892_p9 = scmp.lt.u32.totalorder %s1888_s19, %s2311_s6 }
  0x17   :  { %p1894_p10 = pnand %p1892_p9, %p1889_p8 }
  0x19   :  { %1897 = shalt.err (!%p1894_p10)
}
  0x1a   :  { %s1898_s24 = scalar_lea.vmem %s44_s16, 128  ;;  %p1903_p12 = scmp.lt.s32.totalorder %s44_s16, %s44_s16 }
  0x1b   :  { %p1899_p11 = scmp.ne.s32.totalorder %s44_s16, %s1898_s24  ;;  %p1904_p13 = scmp.lt.s32.totalorder %s1898_s24, %s1898_s24 }
  0x1d   :  { %p1905_p0 = por %p1904_p13, %p1903_p12 }
  0x1f   :  { %p1906_p1 = pnand %p1905_p0, %p1899_p11 }
  0x21   :  { %1909 = shalt.err (!%p1906_p1)
}
  0x22   :  { %46 = dma.hbm_to_vmem [thread:$0]  %s2311_s6, 128, %s44_s16, [#allocation6]  }
  0x23   :  { %1932 = dma.done.wait [#allocation3], 256  }
  0x24   :  { %1933 = vsyncadd [#allocation3], 4294967040 }
  0x25   :  { %1934 = dma.done.wait [#allocation6], 128  }
  0x26   :  { %1935 = vsyncadd [#allocation6], 4294967168  ;;  %v1942_v0 = vmov 0.0   ;;  %vm1943_vm0 = vmmov 0   ;;  %v1818_v1 = vld [vmem:[%s2307_s2] sm:$0xff]   ;;  %v1819_v2 = vld [vmem:[%s2307_s2 + $0x8] sm:$0xff]   ;;  %v165_v53 = vlaneseq }
  0x27   :  { %1641 = vmatprep.subr.bf16.mxu1 %v1942_v0  ;;  %1645 = vmatprep.mubr.msk.bf16.mxu1 %vm1943_vm0, %v1942_v0  ;;  %v2033_v3 = vld [vmem:[%s2305_s0] sm:$0xff]  ;;  %v2038_v4 = vld [vmem:[%s2305_s0 + $0x8] sm:$0xff]  ;;  %vm85_vm1 = vcmask 261120   ;;  %v1550_v6 = vld [vmem:[#allocation5] ss:$0 sm:$0xff]  ;;  %s1944_s0 = smov 104  }
  0x28   :  { %1655 = vmatprep.subr.bf16.mxu0 %v1942_v0  ;;  %1657 = vmatprep.mubr.msk.bf16.mxu0 %vm1943_vm0, %v1942_v0  ;;  %v64_v5 = vpack.c.bf16 %v2038_v4, %v2033_v3  ;;  %s1945_s2 = smov 120   ;;  %s1946_s10 = smov 112   ;;  %vm187_vm2 = vcmask 64512   ;;  %vm704_vm3 = vcmask 1043456   ;;  %v1948_v51 = vmov 1966171168  }
  0x29   :  { %1642 = vmatpush3.bf16.msra.mxu1 %v1818_v1  ;;  %s1947_s12 = smov 96   ;;  %v163_v52 = vunpack.c.l.s4 %v1948_v51  ;;  %v158_v54 = vld [vmem:[%s2306_s1] sm:$0x3]  ;;  %v166_v57 = vshrl.u32 %v165_v53, 7  ;;  %vm1445_vm4 = vcmask 523264  }
  0x2a   :  { %1643 = vmatprep.subr.bf16.mxu1 %v1942_v0  ;;  %v1554_v55 = vadd.f32 -1.0, %v158_v54 }
  0x2b   :  { %v164_v56 = vunpack.c.0.s8 %v163_v52  ;;  %v587_v63 = vsub.s32 0, %v166_v57 }
  0x2c   :  { %v160_v58 = vmul.f32 1e+09, %v1554_v55 }
  0x2d   :  { %1644 = vmatpush3.bf16.msra.mxu1 %v1819_v2  ;;  %v167_v59 = vsub.s32 %v164_v56, %v166_v57 }
  0x2e   :  { %1649 = vmatprep.subr.bf16.mxu1 %v1942_v0 }
  0x2f   :  { %v168_v60 = vrot.slane %v160_v58, %v167_v59 }
  0x30   :  { %1646 = vmatmul.mubr.msk.bf16.vlgmr.msra.gmra.mrb[0].mxu1 %vm85_vm1, %v64_v5 }
  0x31   :  { %1651 = vmatprep.mubr.msk.bf16.mxu1 %vm1943_vm0, %v1942_v0  ;;  %v169_v61 = vcombine.high %v168_v60, %v168_v60  ;;  %v176_v62 = vrot.slane %v168_v60, %v167_v59 }
  0x33   :  { %v183_v1 = vrot.slane %v169_v61, %v167_v59  ;;  %v588_v2 = vrot.slane %v176_v62, %v587_v63 }
 0x103   :  { %v123_v7 = vpop.f32.mrb[0].mxu1 }
 0x104   :  { %v1647_v8 = vpop.f32.mrb[1].mxu1  ;;  %v124_v10 = vadd.f32 %v1550_v6, %v123_v7 }
 0x105   :  { %v126_v9 = vpop.f32.mrb[2].mxu1 }
 0x106   :  { %v127_v11 = vadd.f32 %v1550_v6, %v126_v9  ;;  %v1648_v12 = vpop.f32.mrb[3].mxu1  ;;  %v150_v14 = vpack.c.bf16 %v124_v10, %v124_v10  ;;  %v592_v9 = vrot.slane %v183_v1, %v587_v63 }
 0x108   :  { %v1813_v13 = vpack.i.bf16 %v127_v11, %v124_v10  ;;  %v151_v15 = vpack.c.bf16 %v127_v11, %v127_v11 }
 0x10a   :  { %1814 = vrot.lane.b32.xlu1 %v1813_v13, %s1944_s0  ;;  %1804 = vrot.lane.b32.xlu0 %v1813_v13, %s1945_s2 }
 0x10e   :  { %1809 = vrot.lane.b32.xlu0 %v1813_v13, %s1946_s10  ;;  %185 = vrot.lane.b32.xlu1 %v150_v14, %s1947_s12 }
 0x112   :  { %235 = vrot.lane.b32.xlu0 %v151_v15, %s1947_s12 }
 0x17c   :  { %v1815_v16 = vpop.permute.xlu1 %1814  ;;  %v1805_v17 = vpop.permute.xlu0 %1804 }
 0x17d   :  { %v1807_v18 = vunpack.i.h.bf16 %v1805_v17  ;;  %v1806_v19 = vunpack.i.l.bf16 %v1805_v17  ;;  %v1817_v27 = vunpack.i.h.bf16 %v1815_v16  ;;  %v1816_v28 = vunpack.i.l.bf16 %v1815_v16 }
 0x17f   :  { %v2049_v20 = vpack.c.bf16 %v1807_v18, %v1807_v18  ;;  %v2051_v21 = vpack.c.bf16 %v1806_v19, %v1806_v19  ;;  %v2068_v33 = vpack.c.bf16 %v1817_v27, %v1817_v27  ;;  %v2070_v34 = vpack.c.bf16 %v1816_v28, %v1816_v28 }
 0x180   :  { %v1810_v22 = vpop.permute.xlu0 %1809  ;;  %v186_v23 = vpop.permute.xlu1 %185 }
 0x181   :  { %v1812_v24 = vunpack.i.h.bf16 %v1810_v22  ;;  %v1811_v25 = vunpack.i.l.bf16 %v1810_v22  ;;  %v192_v26 = vsel %vm187_vm2, %v186_v23, 0  ;;  %333 = vrot.lane.b32.xlu0 %v2049_v20, %s1947_s12  ;;  %284 = vrot.lane.b32.xlu1 %v2051_v21, %s1947_s12 }
 0x182   :  { %1650 = vmatpush3.bf16.xpose.msra.mxu1 %v192_v26 }
 0x183   :  { %v2058_v29 = vpack.c.bf16 %v1812_v24, %v1812_v24  ;;  %v2060_v30 = vpack.c.bf16 %v1811_v25, %v1811_v25  ;;  %1661 = vmatprep.subr.bf16.mxu1 %v1942_v0 }
 0x184   :  { %v236_v31 = vpop.permute.xlu0 %235 }
 0x185   :  { %431 = vrot.lane.b32.xlu0 %v2058_v29, %s1947_s12  ;;  %382 = vrot.lane.b32.xlu1 %v2060_v30, %s1947_s12  ;;  %v241_v32 = vsel %vm187_vm2, %v236_v31, 0 }
 0x186   :  { %1656 = vmatpush3.bf16.xpose.msra.mxu0 %v241_v32 }
 0x187   :  { %1667 = vmatprep.subr.bf16.mxu0 %v1942_v0 }
 0x189   :  { %529 = vrot.lane.b32.xlu0 %v2068_v33, %s1947_s12  ;;  %480 = vrot.lane.b32.xlu1 %v2070_v34, %s1947_s12 }
 0x18a   :  { %1652 = vmatmul.mubr.msk.bf16.vlgmr.msra.gmra.mrb[4].mxu1 %vm187_vm2, %v150_v14 }
 0x18b   :  { %1663 = vmatprep.mubr.msk.bf16.mxu1 %vm1943_vm0, %v1942_v0 }
 0x18d   :  { %1658 = vmatmul.mubr.msk.bf16.vlgmr.msra.gmra.mrb[0].mxu0 %vm187_vm2, %v151_v15  ;;  %699 = vrot.lane.b32.xlu0 %v150_v14, %s1939_s11 }
 0x18e   :  { %748 = vrot.lane.b32.xlu1 %v151_v15, %s1939_s11  ;;  %1669 = vmatprep.mubr.msk.bf16.mxu0 %vm1943_vm0, %v1942_v0 }
 0x1f3   :  { %v334_v35 = vpop.permute.xlu0 %333  ;;  %v285_v36 = vpop.permute.xlu1 %284 }
 0x1f4   :  { %v339_v37 = vsel %vm187_vm2, %v334_v35, 0  ;;  %v290_v38 = vsel %vm187_vm2, %v285_v36, 0 }
 0x1f5   :  { %1662 = vmatpush3.bf16.xpose.msra.mxu1 %v290_v38  ;;  %1668 = vmatpush3.bf16.xpose.msra.mxu0 %v339_v37 }
 0x1f6   :  { %1673 = vmatprep.subr.bf16.mxu1 %v1942_v0  ;;  %1679 = vmatprep.subr.bf16.mxu0 %v1942_v0 }
 0x1f7   :  { %v432_v39 = vpop.permute.xlu0 %431  ;;  %v383_v40 = vpop.permute.xlu1 %382 }
 0x1f8   :  { %v437_v41 = vsel %vm187_vm2, %v432_v39, 0  ;;  %v388_v42 = vsel %vm187_vm2, %v383_v40, 0 }
 0x1fb   :  { %v530_v43 = vpop.permute.xlu0 %529  ;;  %v481_v44 = vpop.permute.xlu1 %480 }
 0x1fc   :  { %1664 = vmatmul.mubr.msk.bf16.vlgmr.msra.gmra.mrb[8].mxu1 %vm187_vm2, %v2051_v21  ;;  %1670 = vmatmul.mubr.msk.bf16.vlgmr.msra.gmra.mrb[4].mxu0 %vm187_vm2, %v2049_v20  ;;  %v535_v45 = vsel %vm187_vm2, %v530_v43, 0  ;;  %v486_v46 = vsel %vm187_vm2, %v481_v44, 0 }
 0x1fd   :  { %1674 = vmatpush3.bf16.xpose.msra.mxu1 %v388_v42  ;;  %1680 = vmatpush3.bf16.xpose.msra.mxu0 %v437_v41 }
 0x1fe   :  { %1675 = vmatprep.mubr.msk.bf16.mxu1 %vm1943_vm0, %v1942_v0  ;;  %1681 = vmatprep.mubr.msk.bf16.mxu0 %vm1943_vm0, %v1942_v0 }
 0x1ff   :  { %1685 = vmatprep.subr.bf16.mxu1 %v1942_v0  ;;  %1691 = vmatprep.subr.bf16.mxu0 %v1942_v0  ;;  %v700_v47 = vpop.permute.xlu0 %699 }
 0x200   :  { %v749_v48 = vpop.permute.xlu1 %748  ;;  %v706_v49 = vsel %vm704_vm3, %v700_v47, 0 }
 0x201   :  { %v754_v50 = vsel %vm704_vm3, %v749_v48, 0 }
 0x204   :  { %1676 = vmatmul.mubr.msk.bf16.vlgmr.msra.gmra.mrb[12].mxu1 %vm187_vm2, %v2060_v30  ;;  %1682 = vmatmul.mubr.msk.bf16.vlgmr.msra.gmra.mrb[8].mxu0 %vm187_vm2, %v2058_v29 }
 0x205   :  { %1686 = vmatpush3.bf16.xpose.msra.mxu1 %v486_v46  ;;  %1692 = vmatpush3.bf16.xpose.msra.mxu0 %v535_v45 }
 0x206   :  { %1687 = vmatprep.mubr.msk.bf16.mxu1 %vm1943_vm0, %v1942_v0  ;;  %1693 = vmatprep.mubr.msk.bf16.mxu0 %vm1943_vm0, %v1942_v0 }
 0x207   :  { %1697 = vmatprep.subr.bf16.mxu1 %v1942_v0  ;;  %1703 = vmatprep.subr.bf16.mxu0 %v1942_v0 }
 0x20c   :  { %1688 = vmatmul.mubr.msk.bf16.vlgmr.msra.gmra.mrb[16].mxu1 %vm187_vm2, %v2070_v34  ;;  %1694 = vmatmul.mubr.msk.bf16.vlgmr.msra.gmra.mrb[12].mxu0 %vm187_vm2, %v2068_v33 }
 0x20d   :  { %1698 = vmatpush3.bf16.msra.mxu1 %v706_v49  ;;  %1704 = vmatpush3.bf16.msra.mxu0 %v754_v50 }
 0x20e   :  { %1699 = vmatprep.mubr.msk.bf16.mxu1 %vm1943_vm0, %v1942_v0  ;;  %1705 = vmatprep.mubr.msk.bf16.mxu0 %vm1943_vm0, %v1942_v0 }
 0x20f   :  { %1709 = vmatprep.subr.bf16.mxu1 %v1942_v0  ;;  %1715 = vmatprep.subr.bf16.mxu0 %v1942_v0 }
 0x25d   :  { %v228_v5 = vpop.f32.mrb[4].mxu1 }
 0x25e   :  { %v577_v6 = vmul.f32 0.35355338, %v228_v5  ;;  %v1653_v7 = vpop.f32.mrb[5].mxu1 }
 0x25f   :  { %v231_v8 = vpop.f32.mrb[6].mxu1 }
 0x260   :  { %v1654_v10 = vpop.f32.mrb[7].mxu1  ;;  %v277_v11 = vpop.f32.mrb[0].mxu0  ;;  %v2128_v12 = vadd.f32 %v588_v2, %v577_v6 }
 0x261   :  { %v578_v13 = vmul.f32 0.35355338, %v277_v11  ;;  %v1659_v14 = vpop.f32.mrb[1].mxu0 }
 0x262   :  { %v280_v15 = vpop.f32.mrb[2].mxu0  ;;  %v603_v16 = vsel %vm187_vm2, %v2128_v12, -inf }
 0x263   :  { %604 = vmax.xlane.f32.xlu1 %v603_v16  ;;  %v1660_v17 = vpop.f32.mrb[3].mxu0  ;;  %v596_v18 = vadd.f32 %v592_v9, %v578_v13 }
 0x265   :  { %v606_v19 = vsel %vm187_vm2, %v596_v18, -inf }
 0x266   :  { %607 = vmax.xlane.f32.xlu0 %v606_v19 }
 0x2cf   :  { %v326_v22 = vpop.f32.mrb[8].mxu1  ;;  %v375_v23 = vpop.f32.mrb[4].mxu0 }
 0x2d0   :  { %v579_v24 = vmul.f32 0.35355338, %v326_v22  ;;  %v580_v25 = vmul.f32 0.35355338, %v375_v23  ;;  %v1665_v26 = vpop.f32.mrb[9].mxu1  ;;  %v1671_v27 = vpop.f32.mrb[5].mxu0 }
 0x2d1   :  { %v329_v28 = vpop.f32.mrb[10].mxu1  ;;  %v378_v31 = vpop.f32.mrb[6].mxu0 }
 0x2d2   :  { %v1666_v32 = vpop.f32.mrb[11].mxu1  ;;  %v1672_v35 = vpop.f32.mrb[7].mxu0  ;;  %v598_v36 = vadd.f32 %v592_v9, %v580_v25  ;;  %v597_v37 = vadd.f32 %v588_v2, %v579_v24 }
 0x2d4   :  { %v612_v38 = vsel %vm187_vm2, %v598_v36, -inf  ;;  %v609_v39 = vsel %vm187_vm2, %v597_v37, -inf }
 0x2d5   :  { %613 = vmax.xlane.f32.xlu1 %v612_v38  ;;  %610 = vmax.xlane.f32.xlu0 %v609_v39 }
 0x2d7   :  { %v424_v40 = vpop.f32.mrb[12].mxu1  ;;  %v473_v41 = vpop.f32.mrb[8].mxu0 }
 0x2d8   :  { %v581_v42 = vmul.f32 0.35355338, %v424_v40  ;;  %v582_v43 = vmul.f32 0.35355338, %v473_v41  ;;  %v1677_v44 = vpop.f32.mrb[13].mxu1  ;;  %v1683_v45 = vpop.f32.mrb[9].mxu0 }
 0x2d9   :  { %v427_v46 = vpop.f32.mrb[14].mxu1  ;;  %v476_v47 = vpop.f32.mrb[10].mxu0 }
 0x2da   :  { %v1678_v48 = vpop.f32.mrb[15].mxu1  ;;  %v1684_v49 = vpop.f32.mrb[11].mxu0  ;;  %v600_v50 = vadd.f32 %v592_v9, %v582_v43  ;;  %v2135_v51 = vadd.f32 %v588_v2, %v581_v42 }
 0x2dc   :  { %v618_v52 = vsel %vm187_vm2, %v600_v50, -inf  ;;  %v615_v53 = vsel %vm187_vm2, %v2135_v51, -inf }
 0x2dd   :  { %619 = vmax.xlane.f32.xlu1 %v618_v52  ;;  %616 = vmax.xlane.f32.xlu0 %v615_v53 }
 0x2df   :  { %v522_v54 = vpop.f32.mrb[16].mxu1  ;;  %v571_v55 = vpop.f32.mrb[12].mxu0 }
 0x2e0   :  { %v583_v56 = vmul.f32 0.35355338, %v522_v54  ;;  %v584_v57 = vmul.f32 0.35355338, %v571_v55  ;;  %v1689_v58 = vpop.f32.mrb[17].mxu1  ;;  %v1695_v59 = vpop.f32.mrb[13].mxu0 }
 0x2e1   :  { %v525_v60 = vpop.f32.mrb[18].mxu1  ;;  %v574_v61 = vpop.f32.mrb[14].mxu0 }
 0x2e2   :  { %v1690_v62 = vpop.f32.mrb[19].mxu1  ;;  %v1696_v63 = vpop.f32.mrb[15].mxu0  ;;  %v602_v1 = vadd.f32 %v592_v9, %v584_v57  ;;  %v601_v5 = vadd.f32 %v588_v2, %v583_v56 }
 0x2e4   :  { %v624_v6 = vsel %vm187_vm2, %v602_v1, -inf  ;;  %v621_v7 = vsel %vm187_vm2, %v601_v5, -inf }
 0x2e5   :  { %625 = vmax.xlane.f32.xlu1 %v624_v6  ;;  %622 = vmax.xlane.f32.xlu0 %v621_v7 }
 0x2f0   :  { %v605_v8 = vpop.xlane.xlu1 %604 }
 0x2f1   :  { %v627_v11 = vsub.f32 %v2128_v12, %v605_v8 }
 0x2f3   :  { %v608_v10 = vpop.xlane.xlu0 %607  ;;  %v635_v14 = vmul.f32 1.442695, %v627_v11 }
 0x2f4   :  { %v628_v13 = vsub.f32 %v596_v18, %v608_v10 }
 0x2f5   :  { %1826 = vpow2.f32 %v635_v14 }
 0x2f6   :  { %796 = vrot.lane.b32.xlu1 %v2051_v21, %s1939_s11  ;;  %v637_v9 = vmul.f32 1.442695, %v628_v13 }
 0x2f8   :  { %1828 = vpow2.f32 %v637_v9 }
 0x2fb   :  { %844 = vrot.lane.b32.xlu0 %v2049_v20, %s1939_s11 }
 0x2ff   :  { %v1827_v2 = vpop.eup %1826 }
 0x300   :  { %v651_v17 = vsel %vm187_vm2, %v1827_v2, 0.0 }
 0x302   :  { %v1829_v15 = vpop.eup %1828 }
 0x303   :  { %v654_v16 = vsel %vm187_vm2, %v1829_v15, 0.0 }
 0x31a   :  { %655 = vadd.xlane.f32.xlu1 %v654_v16  ;;  %652 = vadd.xlane.f32.xlu0 %v651_v17 }
 0x32b   :  { %892 = vrot.lane.b32.xlu1 %v2060_v30, %s1939_s11 }
 0x362   :  { %v611_v20 = vpop.xlane.xlu0 %610  ;;  %v614_v21 = vpop.xlane.xlu1 %613 }
 0x363   :  { %v629_v19 = vsub.f32 %v597_v37, %v611_v20  ;;  %v630_v12 = vsub.f32 %v598_v36, %v614_v21 }
 0x365   :  { %v639_v18 = vmul.f32 1.442695, %v629_v19  ;;  %v641_v22 = vmul.f32 1.442695, %v630_v12 }
 0x367   :  { %1830 = vpow2.f32 %v639_v18 }
 0x368   :  { %1832 = vpow2.f32 %v641_v22 }
 0x36a   :  { %v620_v23 = vpop.xlane.xlu1 %619  ;;  %v617_v40 = vpop.xlane.xlu0 %616 }
 0x36b   :  { %v632_v24 = vsub.f32 %v600_v50, %v620_v23  ;;  %v631_v41 = vsub.f32 %v2135_v51, %v617_v40 }
 0x36d   :  { %v645_v25 = vmul.f32 1.442695, %v632_v24  ;;  %v643_v43 = vmul.f32 1.442695, %v631_v41 }
 0x36f   :  { %1834 = vpow2.f32 %v645_v25 }
 0x371   :  { %v2151_v26 = vpop.eup %1830 }
 0x372   :  { %v2153_v27 = vpop.eup %1832  ;;  %v626_v28 = vpop.xlane.xlu1 %625  ;;  %v657_v30 = vsel %vm187_vm2, %v2151_v26, 0.0 }
 0x373   :  { %v634_v31 = vsub.f32 %v602_v1, %v626_v28  ;;  %658 = vadd.xlane.f32.xlu0 %v657_v30  ;;  %v660_v32 = vsel %vm187_vm2, %v2153_v27, 0.0  ;;  %v623_v42 = vpop.xlane.xlu0 %622  ;;  %v1088_v30 = vld [vmem:[%s2308_s3] sm:$0xf] }
 0x374   :  { %661 = vadd.xlane.f32.xlu1 %v660_v32  ;;  %v633_v44 = vsub.f32 %v601_v5, %v623_v42  ;;  %v1096_v32 = vsel %vm704_vm3, %v1088_v30, 0 }
 0x375   :  { %v649_v35 = vmul.f32 1.442695, %v634_v31 }
 0x376   :  { %v647_v45 = vmul.f32 1.442695, %v633_v44  ;;  %v797_v47 = vpop.permute.xlu1 %796 }
 0x377   :  { %1836 = vpow2.f32 %v649_v35  ;;  %v845_v46 = vpop.permute.xlu0 %844  ;;  %v802_v58 = vsel %vm704_vm3, %v797_v47, 0  ;;  %v1089_v35 = vld [vmem:[%s2308_s3 + $0x4] sm:$0xf] }
 0x378   :  { %1838 = vpow2.f32 %v643_v43  ;;  %v850_v59 = vsel %vm704_vm3, %v845_v46, 0  ;;  %v1090_v46 = vld [vmem:[%s2308_s3 + $0x8] sm:$0xf] }
 0x379   :  { %v2159_v36 = vpop.eup %1834  ;;  %1840 = vpow2.f32 %v647_v45  ;;  %v1190_v47 = vsel %vm704_vm3, %v1090_v46, 0 }
 0x37a   :  { %v666_v37 = vsel %vm187_vm2, %v2159_v36, 0.0 }
 0x37b   :  { %667 = vadd.xlane.f32.xlu1 %v666_v37 }
 0x381   :  { %v2163_v38 = vpop.eup %1836 }
 0x382   :  { %v672_v39 = vsel %vm187_vm2, %v2163_v38, 0.0  ;;  %v2172_v48 = vpop.eup %1838 }
 0x383   :  { %673 = vadd.xlane.f32.xlu1 %v672_v39  ;;  %v2176_v52 = vpop.eup %1840 }
 0x389   :  { %940 = vrot.lane.b32.xlu0 %v2058_v29, %s1939_s11  ;;  %v663_v29 = vsel %vm187_vm2, %v2172_v48, 0.0 }
 0x394   :  { %988 = vrot.lane.b32.xlu1 %v2070_v34, %s1939_s11  ;;  %v669_v34 = vsel %vm187_vm2, %v2176_v52, 0.0 }
 0x3a7   :  { %v653_v49 = vpop.xlane.xlu0 %652  ;;  %v656_v50 = vpop.xlane.xlu1 %655 }
 0x3a8   :  { %1842 = vrcp.f32 %v653_v49  ;;  %664 = vadd.xlane.f32.xlu0 %v663_v29 }
 0x3a9   :  { %1844 = vrcp.f32 %v656_v50 }
 0x3ab   :  { %v893_v60 = vpop.permute.xlu1 %892 }
 0x3ac   :  { %670 = vadd.xlane.f32.xlu0 %v669_v34  ;;  %v898_v13 = vsel %vm704_vm3, %v893_v60, 0 }
 0x3b2   :  { %v1843_v51 = vpop.eup %1842 }
 0x3b3   :  { %v1845_v53 = vpop.eup %1844  ;;  %v683_v54 = vmul.f32 %v1843_v51, %v1827_v2 }
 0x3b4   :  { %v684_v55 = vmul.f32 %v1845_v53, %v1829_v15 }
 0x3b5   :  { %v691_v56 = vpack.c.bf16 %v683_v54, %v683_v54 }
 0x3b6   :  { %v692_v57 = vpack.c.bf16 %v684_v55, %v684_v55 }
 0x3b7   :  { %1700 = vmatmul.mubr.msk.bf16.vlgmr.msra.gmra.mrb[20].mxu1 %vm187_vm2, %v691_v56 }
 0x3b8   :  { %1706 = vmatmul.mubr.msk.bf16.vlgmr.msra.gmra.mrb[16].mxu0 %vm187_vm2, %v692_v57  ;;  %1710 = vmatpush3.bf16.msra.mxu1 %v802_v58 }
 0x3b9   :  { %1716 = vmatpush3.bf16.msra.mxu0 %v850_v59  ;;  %1711 = vmatprep.mubr.msk.bf16.mxu1 %vm1943_vm0, %v1942_v0 }
 0x3ba   :  { %1717 = vmatprep.mubr.msk.bf16.mxu0 %vm1943_vm0, %v1942_v0  ;;  %1721 = vmatprep.subr.bf16.mxu1 %v1942_v0 }
 0x3bb   :  { %1727 = vmatprep.subr.bf16.mxu0 %v1942_v0 }
 0x3c2   :  { %1036 = vrot.lane.b32.xlu0 %v2068_v33, %s1939_s11 }
 0x400   :  { %v659_v61 = vpop.xlane.xlu0 %658 }
 0x401   :  { %1846 = vrcp.f32 %v659_v61  ;;  %v662_v62 = vpop.xlane.xlu1 %661 }
 0x402   :  { %1848 = vrcp.f32 %v662_v62 }
 0x404   :  { %v941_v8 = vpop.permute.xlu0 %940 }
 0x405   :  { %v946_v33 = vsel %vm704_vm3, %v941_v8, 0 }
 0x408   :  { %v668_v63 = vpop.xlane.xlu1 %667 }
 0x409   :  { %1850 = vrcp.f32 %v668_v63 }
 0x40b   :  { %v1847_v1 = vpop.eup %1846 }
 0x40c   :  { %v1849_v5 = vpop.eup %1848  ;;  %v685_v6 = vmul.f32 %v1847_v1, %v2151_v26 }
 0x40d   :  { %v686_v7 = vmul.f32 %v1849_v5, %v2153_v27 }
 0x40e   :  { %v693_v10 = vpack.c.bf16 %v685_v6, %v685_v6 }
 0x40f   :  { %v694_v11 = vpack.c.bf16 %v686_v7, %v686_v7 }
 0x410   :  { %1712 = vmatmul.mubr.msk.bf16.vlgmr.msra.gmra.mrb[24].mxu1 %vm187_vm2, %v693_v10  ;;  %v674_v15 = vpop.xlane.xlu1 %673 }
 0x411   :  { %1718 = vmatmul.mubr.msk.bf16.vlgmr.msra.gmra.mrb[20].mxu0 %vm187_vm2, %v694_v11  ;;  %1722 = vmatpush3.bf16.msra.mxu1 %v898_v13  ;;  %1852 = vrcp.f32 %v674_v15 }
 0x412   :  { %1728 = vmatpush3.bf16.msra.mxu0 %v946_v33  ;;  %1729 = vmatprep.mubr.msk.bf16.mxu0 %vm1943_vm0, %v1942_v0 }
 0x413   :  { %1739 = vmatprep.subr.bf16.mxu0 %v1942_v0  ;;  %1723 = vmatprep.mubr.msk.bf16.mxu1 %vm1943_vm0, %v1942_v0  ;;  %v1851_v14 = vpop.eup %1850 }
 0x414   :  { %1733 = vmatprep.subr.bf16.mxu1 %v1942_v0  ;;  %v688_v9 = vmul.f32 %v1851_v14, %v2159_v36  ;;  %v989_v24 = vpop.permute.xlu1 %988  ;;  %v1143_v36 = vsel %vm704_vm3, %v1089_v35, 0 }
 0x415   :  { %v994_v27 = vsel %vm704_vm3, %v989_v24, 0 }
 0x416   :  { %v696_v2 = vpack.c.bf16 %v688_v9, %v688_v9 }
 0x419   :  { %1730 = vmatmul.mubr.msk.bf16.vlgmr.msra.gmra.mrb[24].mxu0 %vm187_vm2, %v696_v2 }
 0x41a   :  { %1741 = vmatprep.mubr.msk.bf16.mxu0 %vm1943_vm0, %v1942_v0 }
 0x41b   :  { %v1853_v17 = vpop.eup %1852 }
 0x41c   :  { %v690_v21 = vmul.f32 %v1853_v17, %v2163_v38 }
 0x41e   :  { %v698_v22 = vpack.c.bf16 %v690_v21, %v690_v21 }
 0x435   :  { %v665_v16 = vpop.xlane.xlu0 %664 }
 0x436   :  { %1854 = vrcp.f32 %v665_v16 }
 0x439   :  { %v671_v20 = vpop.xlane.xlu0 %670 }
 0x43a   :  { %1856 = vrcp.f32 %v671_v20 }
 0x43d   :  { %v1037_v19 = vpop.permute.xlu0 %1036 }
 0x43e   :  { %v1042_v12 = vsel %vm704_vm3, %v1037_v19, 0 }
 0x43f   :  { %1740 = vmatpush3.bf16.msra.mxu0 %v1042_v12 }
 0x440   :  { %v1855_v18 = vpop.eup %1854  ;;  %1751 = vmatprep.subr.bf16.mxu0 %v1942_v0 }
 0x441   :  { %v687_v23 = vmul.f32 %v1855_v18, %v2172_v48  ;;  %v1091_v48 = vld [vmem:[%s2308_s3 + $0xc] sm:$0xf] }
 0x442   :  { %1742 = vmatmul.mubr.msk.bf16.vlgmr.msra.gmra.mrb[28].mxu0 %vm187_vm2, %v698_v22  ;;  %v1237_v53 = vsel %vm704_vm3, %v1091_v48, 0 }
 0x443   :  { %v695_v25 = vpack.c.bf16 %v687_v23, %v687_v23  ;;  %1753 = vmatprep.mubr.msk.bf16.mxu0 %vm1943_vm0, %v1942_v0  ;;  %1752 = vmatpush3.bf16.msra.mxu0 %v1143_v36 }
 0x444   :  { %v1857_v26 = vpop.eup %1856  ;;  %1763 = vmatprep.subr.bf16.mxu0 %v1942_v0 }
 0x445   :  { %1724 = vmatmul.mubr.msk.bf16.vlgmr.msra.gmra.mrb[28].mxu1 %vm187_vm2, %v695_v25  ;;  %v689_v28 = vmul.f32 %v1857_v26, %v2176_v52 }
 0x446   :  { %1734 = vmatpush3.bf16.msra.mxu1 %v994_v27  ;;  %1735 = vmatprep.mubr.msk.bf16.mxu1 %vm1943_vm0, %v1942_v0 }
 0x447   :  { %1745 = vmatprep.subr.bf16.mxu1 %v1942_v0  ;;  %v697_v31 = vpack.c.bf16 %v689_v28, %v689_v28 }
 0x44d   :  { %1736 = vmatmul.mubr.msk.bf16.vlgmr.msra.gmra.mrb[32].mxu1 %vm187_vm2, %v697_v31 }
 0x44e   :  { %1746 = vmatpush3.bf16.msra.mxu1 %v1096_v32  ;;  %1747 = vmatprep.mubr.msk.bf16.mxu1 %vm1943_vm0, %v1942_v0 }
 0x44f   :  { %1757 = vmatprep.subr.bf16.mxu1 %v1942_v0 }
 0x48a   :  { %v742_v37 = vpop.f32.mrb[20].mxu1 }
 0x48b   :  { %v790_v38 = vpop.f32.mrb[16].mxu0  ;;  %v1701_v39 = vpop.f32.mrb[21].mxu1 }
 0x48c   :  { %v1084_v40 = vpack.c.bf16 %v790_v38, %v742_v37  ;;  %v1707_v41 = vpop.f32.mrb[17].mxu0  ;;  %v745_v42 = vpop.f32.mrb[22].mxu1 }
 0x48d   :  { %v793_v43 = vpop.f32.mrb[18].mxu0  ;;  %v1702_v44 = vpop.f32.mrb[23].mxu1 }
 0x48e   :  { %v1708_v45 = vpop.f32.mrb[19].mxu0  ;;  %1748 = vmatmul.mubr.msk.bf16.vlgmr.msra.gmra.mrb[36].mxu1 %vm187_vm2, %v1084_v40 }
 0x48f   :  { %1759 = vmatprep.mubr.msk.bf16.mxu1 %vm1943_vm0, %v1942_v0  ;;  %1758 = vmatpush3.bf16.msra.mxu1 %v1190_v47  ;;  %v1575_v45 = vld [vmem:[#allocation5 + $0x2] ss:$0 sm:$0xff] }
 0x490   :  { %1769 = vmatprep.subr.bf16.mxu1 %v1942_v0 }
 0x4e3   :  { %v838_v49 = vpop.f32.mrb[24].mxu1 }
 0x4e4   :  { %v886_v50 = vpop.f32.mrb[20].mxu0  ;;  %v1713_v29 = vpop.f32.mrb[25].mxu1 }
 0x4e5   :  { %v1085_v52 = vpack.c.bf16 %v886_v50, %v838_v49  ;;  %v1719_v34 = vpop.f32.mrb[21].mxu0  ;;  %v841_v51 = vpop.f32.mrb[26].mxu1 }
 0x4e6   :  { %v889_v54 = vpop.f32.mrb[22].mxu0  ;;  %v1714_v55 = vpop.f32.mrb[27].mxu1 }
 0x4e7   :  { %v1720_v56 = vpop.f32.mrb[23].mxu0  ;;  %1754 = vmatmul.mubr.msk.bf16.vlgmr.msra.gmra.mrb[32].mxu0 %vm187_vm2, %v1085_v52 }
 0x4e8   :  { %1764 = vmatpush3.bf16.msra.mxu0 %v1237_v53  ;;  %1765 = vmatprep.mubr.msk.bf16.mxu0 %vm1943_vm0, %v1942_v0 }
 0x4e9   :  { %1777 = vmatprep.subr.bf16.mxu0 %v1942_v0 }
 0x4ec   :  { %v982_v57 = vpop.f32.mrb[24].mxu0 }
 0x4ed   :  { %v1731_v58 = vpop.f32.mrb[25].mxu0 }
 0x4ee   :  { %v985_v59 = vpop.f32.mrb[26].mxu0 }
 0x4ef   :  { %v1732_v60 = vpop.f32.mrb[27].mxu0  ;;  %v1820_v59 = vld [vmem:[#allocation2] sm:$0xff]  }
 0x4f0   :  { %v1821_v60 = vld [vmem:[#allocation2 + $0x8] sm:$0xff]  }
 0x515   :  { %v1078_v61 = vpop.f32.mrb[28].mxu0 }
 0x516   :  { %v1743_v62 = vpop.f32.mrb[29].mxu0 }
 0x517   :  { %v1081_v63 = vpop.f32.mrb[30].mxu0  ;;  %v1823_v62 = vld [vmem:[%s2310_s5 + $0x8] sm:$0xff]  }
 0x518   :  { %v934_v1 = vpop.f32.mrb[28].mxu1  ;;  %v1744_v5 = vpop.f32.mrb[31].mxu0 }
 0x519   :  { %v1086_v6 = vpack.c.bf16 %v982_v57, %v934_v1  ;;  %v1725_v7 = vpop.f32.mrb[29].mxu1 }
 0x51a   :  { %v937_v8 = vpop.f32.mrb[30].mxu1 }
 0x51b   :  { %v1726_v10 = vpop.f32.mrb[31].mxu1  ;;  %1760 = vmatmul.mubr.msk.bf16.vlgmr.msra.gmra.mrb[40].mxu1 %vm187_vm2, %v1086_v6 }
 0x51c   :  { %1773 = vmatprep.mubr.msk.bf16.mxu1 %vm1943_vm0, %v1942_v0  ;;  %1770 = vmatpush3.bf16.msra.mxu1 %v1820_v59  ;;  %v1589_v59 = vld [vmem:[#allocation5 + $0x7] ss:$0 sm:$0xff] }
 0x51d   :  { %1771 = vmatprep.subr.bf16.mxu1 %v1942_v0 }
 0x520   :  { %v1030_v11 = vpop.f32.mrb[32].mxu1  ;;  %1772 = vmatpush3.bf16.msra.mxu1 %v1821_v60 }
 0x521   :  { %v1087_v13 = vpack.c.bf16 %v1078_v61, %v1030_v11  ;;  %v1737_v33 = vpop.f32.mrb[33].mxu1  ;;  %v1822_v61 = vld [vmem:[%s2310_s5] sm:$0xff]   ;;  %v1576_v11 = vld [vmem:[#allocation5 + $0x3] ss:$0 sm:$0xff] }
 0x522   :  { %v1033_v14 = vpop.f32.mrb[34].mxu1 }
 0x523   :  { %v1738_v9 = vpop.f32.mrb[35].mxu1  ;;  %1766 = vmatmul.mubr.msk.bf16.vlgmr.msra.gmra.mrb[36].mxu0 %vm187_vm2, %v1087_v13 }
 0x524   :  { %1785 = vmatprep.mubr.msk.bf16.mxu0 %vm1943_vm0, %v1942_v0  ;;  %1778 = vmatpush3.bf16.msra.mxu0 %v1822_v61 }
 0x525   :  { %1779 = vmatprep.subr.bf16.mxu0 %v1942_v0 }
 0x528   :  { %1780 = vmatpush3.bf16.msra.mxu0 %v1823_v62 }
 0x529   :  { %1781 = vmatprep.subr.bf16.mxu0 %v1942_v0 }
 0x561   :  { %v1132_v2 = vpop.f32.mrb[36].mxu1 }
 0x562   :  { %v1749_v15 = vpop.f32.mrb[37].mxu1  ;;  %v1280_v21 = vsel %vm85_vm1, %v1132_v2, 0.0  ;;  %v1577_v2 = vld [vmem:[#allocation5 + $0x4] ss:$0 sm:$0xff] }
 0x563   :  { %v1135_v16 = vpop.f32.mrb[38].mxu1 }
 0x564   :  { %v1750_v17 = vpop.f32.mrb[39].mxu1  ;;  %v1287_v23 = vsel %vm85_vm1, %v1135_v16, 0.0 }
 0x5ba   :  { %v1179_v20 = vpop.f32.mrb[32].mxu0 }
 0x5bb   :  { %v1281_v19 = vsel %vm85_vm1, %v1179_v20, 0.0  ;;  %v1755_v12 = vpop.f32.mrb[33].mxu0 }
 0x5bc   :  { %v1282_v18 = vadd.f32 %v1281_v19, %v1280_v21  ;;  %v1182_v22 = vpop.f32.mrb[34].mxu0  ;;  %v1824_v21 = vld [vmem:[%s2310_s5 + $0x10] sm:$0xff]   ;;  %v1825_v19 = vld [vmem:[%s2310_s5 + $0x18] sm:$0xff]   ;;  %s1949_s5 = smov [#allocation7]  }
 0x5bd   :  { %v1288_v24 = vsel %vm85_vm1, %v1182_v22, 0.0  ;;  %v1756_v25 = vpop.f32.mrb[35].mxu0  ;;  %1782 = vmatpush3.bf16.msra.mxu0 %v1824_v21  ;;  %v1578_v12 = vld [vmem:[#allocation5 + $0x1] ss:$0 sm:$0xff]  ;;  %s1537_s27 = sshll.u32 %s1949_s5, 4  ;;  %s1538_s27 = int_to_ptr.vmem [resolvable:$true] %s1537_s27 }
 0x5be   :  { %v1289_v26 = vadd.f32 %v1288_v24, %v1287_v23  ;;  %1783 = vmatprep.subr.bf16.mxu0 %v1942_v0  ;;  %s1910_s6 = scalar_lea.vmem %s1538_s27, 256  ;;  %p1915_p3 = scmp.lt.s32.totalorder %s1538_s27, %s1538_s27 }
 0x5bf   :  { %p1911_p2 = scmp.ne.s32.totalorder %s1538_s27, %s1910_s6  ;;  %p1916_p4 = scmp.lt.s32.totalorder %s1910_s6, %s1910_s6 }
 0x5c1   :  { %1784 = vmatpush3.bf16.msra.mxu0 %v1825_v19  ;;  %p1917_p5 = por %p1916_p4, %p1915_p3 }
 0x5c3   :  { %p1918_p6 = pnand %p1917_p5, %p1911_p2 }
 0x5ee   :  { %v1226_v27 = vpop.f32.mrb[40].mxu1 }
 0x5ef   :  { %v1283_v28 = vsel %vm85_vm1, %v1226_v27, 0.0  ;;  %v1761_v30 = vpop.f32.mrb[41].mxu1 }
 0x5f0   :  { %v1284_v31 = vadd.f32 %v1283_v28, %v1282_v18  ;;  %v1229_v32 = vpop.f32.mrb[42].mxu1 }
 0x5f1   :  { %v1290_v35 = vsel %vm85_vm1, %v1229_v32, 0.0  ;;  %v1762_v36 = vpop.f32.mrb[43].mxu1 }
 0x5f2   :  { %v1291_v37 = vadd.f32 %v1290_v35, %v1289_v26 }
 0x5f6   :  { %v1273_v38 = vpop.f32.mrb[36].mxu0 }
 0x5f7   :  { %v1285_v39 = vsel %vm85_vm1, %v1273_v38, 0.0  ;;  %v1767_v40 = vpop.f32.mrb[37].mxu0 }
 0x5f8   :  { %v1286_v41 = vadd.f32 %v1285_v39, %v1284_v31  ;;  %v1276_v42 = vpop.f32.mrb[38].mxu0  ;;  %v1582_v31 = vld [vmem:[#allocation5 + $0x5] ss:$0 sm:$0xff] }
 0x5f9   :  { %v1292_v43 = vsel %vm85_vm1, %v1276_v42, 0.0  ;;  %v1768_v44 = vpop.f32.mrb[39].mxu0 }
 0x5fa   :  { %v1294_v46 = vadd.f32 %v1286_v41, %v2033_v3  ;;  %v1293_v47 = vadd.f32 %v1292_v43, %v1291_v37 }
 0x5fc   :  { %v1295_v48 = vadd.f32 %v1293_v47, %v2038_v4  ;;  %v1300_v49 = vadd.f32 %v1575_v45, %v1294_v46 }
 0x5fe   :  { %v1302_v50 = vsel %vm85_vm1, %v1300_v49, 0.0  ;;  %v1301_v29 = vadd.f32 %v1575_v45, %v1295_v48 }
 0x5ff   :  { %1303 = vadd.xlane.f32.xlu1 %v1302_v50 }
 0x600   :  { %v1305_v52 = vsel %vm85_vm1, %v1301_v29, 0.0 }
 0x601   :  { %1306 = vadd.xlane.f32.xlu0 %v1305_v52 }
 0x68c   :  { %v1304_v34 = vpop.xlane.xlu1 %1303 }
 0x68d   :  { %v1309_v51 = vmul.f32 0.03125, %v1304_v34 }
 0x68e   :  { %v1307_v53 = vpop.xlane.xlu0 %1306 }
 0x68f   :  { %v1311_v54 = vsub.f32 %v1300_v49, %v1309_v51  ;;  %v1310_v55 = vmul.f32 0.03125, %v1307_v53 }
 0x691   :  { %v1312_v56 = vsub.f32 %v1301_v29, %v1310_v55  ;;  %v1313_v57 = vmul.f32 %v1311_v54, %v1311_v54 }
 0x693   :  { %v1315_v3 = vsel %vm85_vm1, %v1313_v57, 0.0  ;;  %v1314_v58 = vmul.f32 %v1312_v56, %v1312_v56 }
 0x694   :  { %1316 = vadd.xlane.f32.xlu0 %v1315_v3  ;;  %v1588_v3 = vld [vmem:[#allocation5 + $0x6] ss:$0 sm:$0xff] }
 0x695   :  { %v1318_v4 = vsel %vm85_vm1, %v1314_v58, 0.0 }
 0x696   :  { %1319 = vadd.xlane.f32.xlu1 %v1318_v4 }
 0x721   :  { %v1317_v63 = vpop.xlane.xlu0 %1316 }
 0x722   :  { %v1321_v1 = vmul.f32 0.03125, %v1317_v63 }
 0x723   :  { %v1320_v5 = vpop.xlane.xlu1 %1319 }
 0x724   :  { %v1323_v6 = vadd.f32 1e-05, %v1321_v1  ;;  %v1322_v7 = vmul.f32 0.03125, %v1320_v5 }
 0x726   :  { %1858 = vrsqrt.f32 %v1323_v6  ;;  %v1324_v8 = vadd.f32 1e-05, %v1322_v7 }
 0x728   :  { %1860 = vrsqrt.f32 %v1324_v8 }
 0x730   :  { %v1859_v10 = vpop.eup %1858 }
 0x731   :  { %v1327_v13 = vmul.f32 %v1859_v10, %v1311_v54 }
 0x732   :  { %v1861_v33 = vpop.eup %1860 }
 0x733   :  { %v1333_v14 = vmul.f32 %v1576_v11, %v1327_v13  ;;  %v1328_v9 = vmul.f32 %v1861_v33, %v1312_v56 }
 0x735   :  { %v1334_v15 = vmul.f32 %v1576_v11, %v1328_v9  ;;  %v1339_v16 = vadd.f32 %v1577_v2, %v1333_v14 }
 0x737   :  { %v1340_v17 = vadd.f32 %v1577_v2, %v1334_v15 }
 0x739   :  { %v1341_v20 = vpack.c.bf16 %v1340_v17, %v1339_v16 }
 0x73b   :  { %1774 = vmatmul.mubr.msk.bf16.vlgmr.msra.gmra.mrb[44].mxu1 %vm85_vm1, %v1341_v20 }
 0x80e   :  { %v1399_v18 = vpop.f32.mrb[44].mxu1 }
 0x80f   :  { %v1400_v22 = vadd.f32 %v1578_v12, %v1399_v18  ;;  %v1775_v23 = vpop.f32.mrb[45].mxu1 }
 0x810   :  { %v1402_v24 = vpop.f32.mrb[46].mxu1 }
 0x811   :  { %v1403_v25 = vadd.f32 %v1578_v12, %v1402_v24  ;;  %v1776_v26 = vpop.f32.mrb[47].mxu1  ;;  %v1406_v27 = vmax.f32 %v1400_v22, 0.0 }
 0x813   :  { %v1407_v28 = vmax.f32 %v1403_v25, 0.0 }
 0x815   :  { %v1408_v30 = vpack.c.bf16 %v1407_v28, %v1406_v27 }
 0x817   :  { %1786 = vmatmul.mubr.msk.bf16.vlgmr.msra.gmra.mrb[40].mxu0 %vm1445_vm4, %v1408_v30 }
 0x8ea   :  { %v1483_v32 = vpop.f32.mrb[40].mxu0 }
 0x8eb   :  { %v1484_v0 = vadd.f32 %v1582_v31, %v1483_v32  ;;  %v1787_v35 = vpop.f32.mrb[41].mxu0 }
 0x8ec   :  { %v1486_v36 = vpop.f32.mrb[42].mxu0 }
 0x8ed   :  { %v1487_v37 = vadd.f32 %v1582_v31, %v1486_v36  ;;  %v1788_v38 = vpop.f32.mrb[43].mxu0  ;;  %v1490_v39 = vadd.f32 %v1484_v0, %v1339_v16 }
 0x8ef   :  { %v1492_v40 = vsel %vm85_vm1, %v1490_v39, 0.0  ;;  %v1491_v41 = vadd.f32 %v1487_v37, %v1340_v17 }
 0x8f0   :  { %1493 = vadd.xlane.f32.xlu0 %v1492_v40 }
 0x8f1   :  { %v1495_v42 = vsel %vm85_vm1, %v1491_v41, 0.0 }
 0x8f2   :  { %1496 = vadd.xlane.f32.xlu1 %v1495_v42 }
 0x97d   :  { %v1494_v43 = vpop.xlane.xlu0 %1493 }
 0x97e   :  { %v1498_v44 = vmul.f32 0.03125, %v1494_v43 }
 0x97f   :  { %v1497_v45 = vpop.xlane.xlu1 %1496 }
 0x980   :  { %v1500_v46 = vsub.f32 %v1490_v39, %v1498_v44  ;;  %v1499_v47 = vmul.f32 0.03125, %v1497_v45 }
 0x982   :  { %v1501_v48 = vsub.f32 %v1491_v41, %v1499_v47  ;;  %v1502_v49 = vmul.f32 %v1500_v46, %v1500_v46 }
 0x984   :  { %v1504_v50 = vsel %vm85_vm1, %v1502_v49, 0.0  ;;  %v1503_v29 = vmul.f32 %v1501_v48, %v1501_v48 }
 0x985   :  { %1505 = vadd.xlane.f32.xlu0 %v1504_v50 }
 0x986   :  { %v1507_v52 = vsel %vm85_vm1, %v1503_v29, 0.0 }
 0x987   :  { %1508 = vadd.xlane.f32.xlu1 %v1507_v52 }
 0xa12   :  { %v1506_v34 = vpop.xlane.xlu0 %1505 }
 0xa13   :  { %v1510_v51 = vmul.f32 0.03125, %v1506_v34 }
 0xa14   :  { %v1509_v53 = vpop.xlane.xlu1 %1508 }
 0xa15   :  { %v1512_v54 = vadd.f32 1e-05, %v1510_v51  ;;  %v1511_v55 = vmul.f32 0.03125, %v1509_v53 }
 0xa17   :  { %1862 = vrsqrt.f32 %v1512_v54  ;;  %v1513_v56 = vadd.f32 1e-05, %v1511_v55 }
 0xa19   :  { %1864 = vrsqrt.f32 %v1513_v56 }
 0xa21   :  { %v1863_v57 = vpop.eup %1862 }
 0xa22   :  { %v1516_v58 = vmul.f32 %v1863_v57, %v1500_v46 }
 0xa23   :  { %v1865_v4 = vpop.eup %1864 }
 0xa24   :  { %v1522_v60 = vmul.f32 %v1588_v3, %v1516_v58  ;;  %v1517_v61 = vmul.f32 %v1865_v4, %v1501_v48 }
 0xa26   :  { %v1523_v62 = vmul.f32 %v1588_v3, %v1517_v61  ;;  %v1528_v63 = vadd.f32 %v1589_v59, %v1522_v60 }
 0xa28   :  { %v1529_v1 = vadd.f32 %v1589_v59, %v1523_v62  ;;  %1530 = vst.msk [vmem:[#allocation7] sm:$0xff] %vm85_vm1, %v1528_v63 }
 0xa2a   :  { %1531 = vst.msk [vmem:[#allocation7 + $0x8] sm:$0xff] %vm85_vm1, %v1529_v1 }
 0xa2b   :  { %1921 = shalt.err (!%p1918_p6)
}
 0xa2c   :  { %s1922_s30 = scalar_lea.hbm %s2312_s7, 256 }
 0xa2d   :  { %p1923_p7 = scmp.ne.s32.totalorder %s2312_s7, %s1922_s30  ;;  %p1926_p8 = scmp.lt.u32.totalorder %s1922_s30, %s2312_s7 }
 0xa2f   :  { %p1928_p9 = pnand %p1926_p8, %p1923_p7 }
 0xa31   :  { %1931 = shalt.err (!%p1928_p9)
}
 0xa32   :  { %s1950_s10 = smov 128   ;;  %s1951_s12 = smov 8  }
 0xa33   :  { %1543 = dma.vmem_to_hbm [thread:$0]  %s1538_s27, 256, %s2312_s7, [#allocation4], %s1950_s10, %s1950_s10, %s1951_s12  }
 0xa34   :  { %1936 = dma.done.wait [#allocation4], 256  }
 0xa35   :  { %1937 = vsyncadd [#allocation4], 4294967040 }
 0xa36   :  { %1547 = vsyncpa [#allocation3], 1 }
 0xa37   :  { %1548 = vsyncpa [#allocation6], 1 }
 0xa38   :  { %1549 = vsyncpa [#allocation4], 1 }

</bundles_post_ra>
